<compile_context>
chip_gen: v7x
topology: tpu7x:2x2x1
jax: 0.10.0
libtpu: 0.0.40
codegen_flags: <defaults>
</compile_context>

<pallas_src>
import jax
import jax.numpy as jnp
import numpy as np
from jax.experimental import pallas as pl
from jax.experimental.pallas import tpu as pltpu

_LANES = 128
_DEFAULT_TILE_R = 1024  # rows of 128 lanes per grid step (~3 MiB per block)


def _reward_kernel(packed_ref, out_ref):
    # packed_ref: (5, TILE_R, 128) f32   out_ref: (TILE_R, 128) f32
    s0 = packed_ref[0]          # state feature 0
    s1 = packed_ref[1]          # state feature 1
    s2 = packed_ref[2]          # state feature 2
    i0 = packed_ref[3]          # tgt_out_idx[:, 0] (exact small ints in f32)
    i1 = packed_ref[4]          # tgt_out_idx[:, 1]

    # Exact one-hot detection (f32 compares everywhere -> v5e friendly).
    is0 = (s0 == 1.0) & (s1 == 0.0) & (s2 == 0.0)      # [1,0,0]
    is1 = (s0 == 0.0) & (s1 == 1.0) & (s2 == 0.0)      # [0,1,0]
    is2 = (s0 == 0.0) & (s1 == 0.0) & (s2 == 1.0)      # [0,0,1]
    valid_f = (is0 | is1 | is2).astype(jnp.float32)

    match_f = ((i0 == 2.0) & (i1 == 3.0)).astype(jnp.float32)

    # base 0/2/4 straight from the (validated) one-hot values; +1 on idx match
    # else +2; zero for non-one-hot (padding) rows via the validity gate.
    out_ref[...] = (2.0 * s1 + 4.0 * s2 + (2.0 - match_f)) * valid_f


def fake_seq2slate_reward_forward(state, src_seq, tgt_out_seq, src_src_mask,
                                  tgt_out_idx, *, tile_r=_DEFAULT_TILE_R):
    """Mirrors FakeSeq2SlateRewardNetwork.forward. Returns (B, 1) float32."""
    del src_seq, tgt_out_seq, src_src_mask  # unused, as in the reference module
    batch = state.shape[0]

    state = state.astype(jnp.float32)                    # (B, 3)
    idx_f = tgt_out_idx.astype(jnp.float32)              # (B, 2), exact small ints
    feats = jnp.concatenate([state, idx_f], axis=1)      # (B, 5)

    # Fold the batch onto (rows, 128) sublane x lane tiles, feature-major.
    r_needed = pl.cdiv(batch, _LANES)
    if r_needed <= tile_r:
        r = max(r_needed, 1)
        num_tiles = None                                  # no-grid fast path
    else:
        num_tiles = pl.cdiv(r_needed, tile_r)
        r = num_tiles * tile_r

    b_pad = r * _LANES
    # Padding rows are all-zero -> not a valid one-hot -> kernel emits 0.0.
    feats = jnp.pad(feats, ((0, b_pad - batch), (0, 0)))  # (b_pad, 5)
    packed = feats.T.reshape(5, r, _LANES)                # (5, R, 128)

    out_shape = jax.ShapeDtypeStruct((r, _LANES), jnp.float32)
    vmem_limit = 32 * 1024 * 1024

    if num_tiles is None:
        out = pl.pallas_call(
            _reward_kernel,
            out_shape=out_shape,
            compiler_params=pltpu.CompilerParams(vmem_limit_bytes=vmem_limit),
        )(packed)
    else:
        out = pl.pallas_call(
            _reward_kernel,
            out_shape=out_shape,
            grid=(num_tiles,),
            in_specs=[pl.BlockSpec((5, tile_r, _LANES), lambda i: (0, i, 0))],
            out_specs=pl.BlockSpec((tile_r, _LANES), lambda i: (i, 0)),
            compiler_params=pltpu.CompilerParams(
                dimension_semantics=("parallel",),
                vmem_limit_bytes=vmem_limit),
        )(packed)

    # Back to the (B, 1) layout of the PyTorch module.
    return out.reshape(-1)[:batch].reshape(batch, 1)


def _reference_numpy(state, tgt_out_idx):
    state = np.asarray(state)
    idx = np.asarray(tgt_out_idx)
    out = []
    for i in range(state.shape[0]):
        s, t = state[i], idx[i]
        idx_match = bool((t == np.array([2, 3])).all())
        if (s == np.array([1.0, 0.0, 0.0])).all():
            out.append(1.0 if idx_match else 2.0)
        elif (s == np.array([0.0, 1.0, 0.0])).all():
            out.append(3.0 if idx_match else 4.0)
        elif (s == np.array([0.0, 0.0, 1.0])).all():
            out.append(5.0 if idx_match else 6.0)
        else:
            out.append(0.0)
    return np.asarray(out, dtype=np.float32)[:, None]


def _make_inputs(key, batch, src_len=4, candidate_dim=5, tgt_len=2):
    k_state, k_idx, k_src, k_tgt = jax.random.split(key, 4)

    # state: random one-hot rows of dim 3.
    onehot_ids = jax.random.randint(k_state, (batch,), 0, 3)
    state = jax.nn.one_hot(onehot_ids, 3, dtype=jnp.float32)

    # tgt_out_idx: half the batch gets [2,3], the rest random other indices.
    rand_idx = jax.random.randint(k_idx, (batch, 2), 0, 2).astype(jnp.int32)
    match_row = jnp.array([2, 3], dtype=jnp.int32)
    use_match = (jnp.arange(batch) % 2 == 0)[:, None]
    tgt_out_idx = jnp.where(use_match, match_row[None, :], rand_idx)

    # Unused auxiliary inputs (shape parity with the reference forward).
    src_seq = jax.random.normal(k_src, (batch, src_len, candidate_dim),
                                jnp.float32)
    tgt_out_seq = jax.random.normal(k_tgt, (batch, tgt_len, candidate_dim),
                                    jnp.float32)
    src_src_mask = jnp.ones((batch, src_len, src_len), jnp.float32)
    return state, src_seq, tgt_out_seq, src_src_mask, tgt_out_idx


if __name__ == "__main__":
    key = jax.random.PRNGKey(0)
    k_small, k_big, k_lin_w, k_lin_b = jax.random.split(key, 4)

    # Deterministic parameters for the (unused) fake_parms = nn.Linear(1, 1).
    fake_parms_w = jax.random.uniform(k_lin_w, (1, 1), jnp.float32, -1.0, 1.0)
    fake_parms_b = jax.random.uniform(k_lin_b, (1,), jnp.float32, -1.0, 1.0)
    _ = (fake_parms_w, fake_parms_b)  # present for parity; not used in forward

    # --- Small batch: exercises the no-grid fast path. ---
    batch = 4
    state, src_seq, tgt_out_seq, src_src_mask, tgt_out_idx = _make_inputs(
        k_small, batch)
    out = fake_seq2slate_reward_forward(state, src_seq, tgt_out_seq,
                                        src_src_mask, tgt_out_idx)
    out = jax.block_until_ready(out)
    ref = _reference_numpy(state, tgt_out_idx)
    assert out.shape == (batch, 1), out.shape
    assert out.dtype == jnp.float32, out.dtype
    np.testing.assert_allclose(np.asarray(out), ref, rtol=0, atol=0)

    # --- Larger batch with a small tile override: exercises the tiled /
    #     multi-grid-step path (same kernel, TILE_R=8 -> 2 grid steps). ---
    batch2 = 2048
    state2, src_seq2, tgt_out_seq2, src_src_mask2, tgt_out_idx2 = _make_inputs(
        k_big, batch2)
    out2 = fake_seq2slate_reward_forward(state2, src_seq2, tgt_out_seq2,
                                         src_src_mask2, tgt_out_idx2,
                                         tile_r=8)
    out2 = jax.block_until_ready(out2)
    ref2 = _reference_numpy(state2, tgt_out_idx2)
    assert out2.shape == (batch2, 1), out2.shape
    np.testing.assert_allclose(np.asarray(out2), ref2, rtol=0, atol=0)

    print("KERNEL_OK")
</pallas_src>

<mosaic_0001>
module attributes {stable_mosaic.version = 11 : i64} {
  func.func @_reward_kernel(%arg0: memref<5x1x128xf32, #tpu.memory_space<vmem>>, %arg1: memref<1x128xf32, #tpu.memory_space<vmem>>) attributes {dimension_semantics = [], scalar_prefetch = 0 : i64, scratch_operands = 0 : i64, tpu.core_type = #tpu.core_type<tc>} {
    %c0 = arith.constant 0 : index
    %c0_0 = arith.constant 0 : index
    %c0_1 = arith.constant 0 : index
    %0 = vector.load %arg0[%c0, %c0_0, %c0_1] : memref<5x1x128xf32, #tpu.memory_space<vmem>>, vector<1x1x128xf32>
    %1 = vector.shape_cast %0 : vector<1x1x128xf32> to vector<1x128xf32>
    %c1 = arith.constant 1 : index
    %c0_2 = arith.constant 0 : index
    %c0_3 = arith.constant 0 : index
    %2 = vector.load %arg0[%c1, %c0_2, %c0_3] : memref<5x1x128xf32, #tpu.memory_space<vmem>>, vector<1x1x128xf32>
    %3 = vector.shape_cast %2 : vector<1x1x128xf32> to vector<1x128xf32>
    %c2 = arith.constant 2 : index
    %c0_4 = arith.constant 0 : index
    %c0_5 = arith.constant 0 : index
    %4 = vector.load %arg0[%c2, %c0_4, %c0_5] : memref<5x1x128xf32, #tpu.memory_space<vmem>>, vector<1x1x128xf32>
    %5 = vector.shape_cast %4 : vector<1x1x128xf32> to vector<1x128xf32>
    %c3 = arith.constant 3 : index
    %c0_6 = arith.constant 0 : index
    %c0_7 = arith.constant 0 : index
    %6 = vector.load %arg0[%c3, %c0_6, %c0_7] : memref<5x1x128xf32, #tpu.memory_space<vmem>>, vector<1x1x128xf32>
    %7 = vector.shape_cast %6 : vector<1x1x128xf32> to vector<1x128xf32>
    %c4 = arith.constant 4 : index
    %c0_8 = arith.constant 0 : index
    %c0_9 = arith.constant 0 : index
    %8 = vector.load %arg0[%c4, %c0_8, %c0_9] : memref<5x1x128xf32, #tpu.memory_space<vmem>>, vector<1x1x128xf32>
    %9 = vector.shape_cast %8 : vector<1x1x128xf32> to vector<1x128xf32>
    %cst = arith.constant 1.000000e+00 : f32
    %10 = vector.broadcast %cst : f32 to vector<1x128xf32>
    %11 = arith.cmpf oeq, %1, %10 : vector<1x128xf32>
    %cst_10 = arith.constant 0.000000e+00 : f32
    %12 = vector.broadcast %cst_10 : f32 to vector<1x128xf32>
    %13 = arith.cmpf oeq, %3, %12 : vector<1x128xf32>
    %14 = arith.andi %11, %13 : vector<1x128xi1>
    %cst_11 = arith.constant 0.000000e+00 : f32
    %15 = vector.broadcast %cst_11 : f32 to vector<1x128xf32>
    %16 = arith.cmpf oeq, %5, %15 : vector<1x128xf32>
    %17 = arith.andi %14, %16 : vector<1x128xi1>
    %cst_12 = arith.constant 0.000000e+00 : f32
    %18 = vector.broadcast %cst_12 : f32 to vector<1x128xf32>
    %19 = arith.cmpf oeq, %1, %18 : vector<1x128xf32>
    %cst_13 = arith.constant 1.000000e+00 : f32
    %20 = vector.broadcast %cst_13 : f32 to vector<1x128xf32>
    %21 = arith.cmpf oeq, %3, %20 : vector<1x128xf32>
    %22 = arith.andi %19, %21 : vector<1x128xi1>
    %cst_14 = arith.constant 0.000000e+00 : f32
    %23 = vector.broadcast %cst_14 : f32 to vector<1x128xf32>
    %24 = arith.cmpf oeq, %5, %23 : vector<1x128xf32>
    %25 = arith.andi %22, %24 : vector<1x128xi1>
    %cst_15 = arith.constant 0.000000e+00 : f32
    %26 = vector.broadcast %cst_15 : f32 to vector<1x128xf32>
    %27 = arith.cmpf oeq, %1, %26 : vector<1x128xf32>
    %cst_16 = arith.constant 0.000000e+00 : f32
    %28 = vector.broadcast %cst_16 : f32 to vector<1x128xf32>
    %29 = arith.cmpf oeq, %3, %28 : vector<1x128xf32>
    %30 = arith.andi %27, %29 : vector<1x128xi1>
    %cst_17 = arith.constant 1.000000e+00 : f32
    %31 = vector.broadcast %cst_17 : f32 to vector<1x128xf32>
    %32 = arith.cmpf oeq, %5, %31 : vector<1x128xf32>
    %33 = arith.andi %30, %32 : vector<1x128xi1>
    %34 = arith.ori %17, %25 : vector<1x128xi1>
    %35 = arith.ori %34, %33 : vector<1x128xi1>
    %36 = arith.extui %35 : vector<1x128xi1> to vector<1x128xi32>
    %37 = arith.sitofp %36 : vector<1x128xi32> to vector<1x128xf32>
    %cst_18 = arith.constant 2.000000e+00 : f32
    %38 = vector.broadcast %cst_18 : f32 to vector<1x128xf32>
    %39 = arith.cmpf oeq, %7, %38 : vector<1x128xf32>
    %cst_19 = arith.constant 3.000000e+00 : f32
    %40 = vector.broadcast %cst_19 : f32 to vector<1x128xf32>
    %41 = arith.cmpf oeq, %9, %40 : vector<1x128xf32>
    %42 = arith.andi %39, %41 : vector<1x128xi1>
    %43 = arith.extui %42 : vector<1x128xi1> to vector<1x128xi32>
    %44 = arith.sitofp %43 : vector<1x128xi32> to vector<1x128xf32>
    %cst_20 = arith.constant 2.000000e+00 : f32
    %45 = vector.broadcast %cst_20 : f32 to vector<1x128xf32>
    %46 = arith.mulf %45, %3 : vector<1x128xf32>
    %cst_21 = arith.constant 4.000000e+00 : f32
    %47 = vector.broadcast %cst_21 : f32 to vector<1x128xf32>
    %48 = arith.mulf %47, %5 : vector<1x128xf32>
    %49 = arith.addf %46, %48 : vector<1x128xf32>
    %cst_22 = arith.constant 2.000000e+00 : f32
    %50 = vector.broadcast %cst_22 : f32 to vector<1x128xf32>
    %51 = arith.subf %50, %44 : vector<1x128xf32>
    %52 = arith.addf %49, %51 : vector<1x128xf32>
    %53 = arith.mulf %52, %37 : vector<1x128xf32>
    %c0_23 = arith.constant 0 : index
    %c0_24 = arith.constant 0 : index
    %54 = vector.load %arg1[%c0_23, %c0_24] : memref<1x128xf32, #tpu.memory_space<vmem>>, vector<1x128xf32>
    tpu.vector_store %arg1[%c0_23, %c0_24], %53 {strides = array<i32>} : memref<1x128xf32, #tpu.memory_space<vmem>>, vector<1x128xf32>,
    return
  }
}

</mosaic_0001>

<bundles_post_ra>
// kernel: tpu_custom_call.1
= control target key start
LH: loop header
LB: loop body
LE: loop exit
PB: predicated region body
PF: predicated region fallthrough
CT: control target
= control target key end

     0   :  { %6 = vsyncpa [#allocation3], 0  ;;  %s169_s0 = inlined_call_operand.hbm [shape: f32[5,1,128], index: 0, kind: input, shape index: {}]   ;;  %s170_s1 = inlined_call_operand.hbm [shape: f32[1,128], index: 1, kind: output, shape index: {}]  }
   0x1   :  { %7 = vsyncpa [#allocation4], 0  ;;  %s130_s6 = smov [#allocation2]   ;;  %s82_s10 = scalar_lea.hbm %s169_s0, 80 }
   0x2   :  { %s13_s7 = sshll.u32 %s130_s6, 4  ;;  %p83_p0 = scmp.ne.s32.totalorder %s169_s0, %s82_s10  ;;  %s14_s7 = int_to_ptr.vmem [resolvable:$true] %s13_s7 }
   0x3   :  { %p86_p1 = scmp.lt.u32.totalorder %s82_s10, %s169_s0 }
   0x5   :  { %p88_p2 = pnand %p86_p1, %p83_p0 }
   0x7   :  { %91 = shalt.err (!%p88_p2)
}
   0x8   :  { %s92_s15 = scalar_lea.vmem %s14_s7, 80  ;;  %s96_s16 = scalar_lea.vmem %s14_s7, 96 }
   0x9   :  { %p93_p3 = scmp.ne.s32.totalorder %s14_s7, %s92_s15  ;;  %p97_p4 = scmp.lt.s32.totalorder %s14_s7, %s14_s7 }
   0xa   :  { %p98_p5 = scmp.lt.s32.totalorder %s96_s16, %s92_s15 }
   0xc   :  { %p99_p6 = por %p98_p5, %p97_p4 }
   0xe   :  { %p100_p7 = pnand %p99_p6, %p93_p3 }
  0x10   :  { %103 = shalt.err (!%p100_p7)
}
  0x11   :  { %s131_s17 = smov 16   ;;  %s132_s18 = smov 1  }
  0x12   :  { %19 = dma.hbm_to_vmem [thread:$0]  %s169_s0, 80, %s14_s7, [#allocation3], %s131_s17, %s131_s17, %s132_s18  }
  0x13   :  { %126 = dma.done.wait [#allocation3], 80  }
  0x14   :  { %127 = vsyncadd [#allocation3], 4294967216  ;;  %v23_v0 = vld [vmem:[#allocation2] sm:$0x1]  ;;  %v25_v1 = vld [vmem:[#allocation2 + $0x1] sm:$0x1] }
  0x15   :  { %v27_v2 = vld [vmem:[#allocation2 + $0x2] sm:$0x1]  ;;  %vm32_vm0 = vcmp.eq.f32.partialorder %v23_v0, 1.0  ;;  %vm33_vm1 = vcmp.eq.f32.partialorder %v25_v1, 0.0  ;;  %vm37_vm4 = vcmp.eq.f32.partialorder %v23_v0, 0.0  ;;  %vm38_vm5 = vcmp.eq.f32.partialorder %v25_v1, 1.0 }
  0x16   :  { %vm34_vm2 = vmand %vm32_vm0, %vm33_vm1  ;;  %vm35_vm3 = vcmp.eq.f32.partialorder %v27_v2, 0.0  ;;  %v29_v3 = vld [vmem:[#allocation2 + $0x3] sm:$0x1]  ;;  %v31_v4 = vld [vmem:[#allocation2 + $0x4] sm:$0x1]  ;;  %vm42_vm8 = vcmp.eq.f32.partialorder %v27_v2, 1.0 }
  0x17   :  { %vm36_vm6 = vmand %vm34_vm2, %vm35_vm3  ;;  %v53_v5 = vmul.f32 2.0, %v25_v1  ;;  %v54_v6 = vmul.f32 4.0, %v27_v2  ;;  %vm48_vm12 = vcmp.eq.f32.partialorder %v29_v3, 2.0  ;;  %vm49_vm13 = vcmp.eq.f32.partialorder %v31_v4, 3.0  ;;  %s134_s0 = smov [#allocation5]  }
  0x18   :  { %vm39_vm7 = vmand %vm37_vm4, %vm38_vm5  ;;  %v133_v8 = vmov 0.0   ;;  %s66_s21 = sshll.u32 %s134_s0, 4  ;;  %s67_s21 = int_to_ptr.vmem [resolvable:$true] %s66_s21 }
  0x19   :  { %vm40_vm9 = vmand %vm39_vm7, %vm35_vm3  ;;  %v55_v7 = vadd.f32 %v54_v6, %v53_v5  ;;  %s104_s22 = scalar_lea.vmem %s67_s21, 16  ;;  %s108_s23 = scalar_lea.vmem %s67_s21, 32 }
  0x1a   :  { %vm41_vm10 = vmand %vm37_vm4, %vm33_vm1  ;;  %p105_p8 = scmp.ne.s32.totalorder %s67_s21, %s104_s22  ;;  %p109_p9 = scmp.lt.s32.totalorder %s67_s21, %s67_s21 }
  0x1b   :  { %vm43_vm11 = vmand %vm41_vm10, %vm42_vm8  ;;  %p110_p10 = scmp.lt.s32.totalorder %s108_s23, %s104_s22 }
  0x1c   :  { %vm44_vm14 = vmor %vm36_vm6, %vm40_vm9 }
  0x1d   :  { %vm45_vm15 = vmor %vm44_vm14, %vm43_vm11  ;;  %p111_p11 = por %p110_p10, %p109_p9 }
  0x1e   :  { %vm50_vm0 = vmand %vm48_vm12, %vm49_vm13  ;;  %v75_v11 = vsel %vm45_vm15, 1.0, %v133_v8 }
  0x1f   :  { %v76_v9 = vsel %vm50_vm0, 1.0, %v133_v8  ;;  %p112_p12 = pnand %p111_p11, %p105_p8 }
  0x20   :  { %v56_v10 = vsub.f32 2.0, %v76_v9 }
  0x22   :  { %v57_v12 = vadd.f32 %v56_v10, %v55_v7 }
  0x24   :  { %v58_v13 = vmul.f32 %v75_v11, %v57_v12 }
  0x26   :  { %59 = vst [vmem:[#allocation5] sm:$0x1] %v58_v13 }
  0x27   :  { %115 = shalt.err (!%p112_p12)
}
  0x28   :  { %s116_s26 = scalar_lea.hbm %s170_s1, 16 }
  0x29   :  { %p117_p13 = scmp.ne.s32.totalorder %s170_s1, %s116_s26  ;;  %p120_p0 = scmp.lt.u32.totalorder %s116_s26, %s170_s1 }
  0x2b   :  { %p122_p1 = pnand %p120_p0, %p117_p13 }
  0x2d   :  { %125 = shalt.err (!%p122_p1)
}
  0x2e   :  { %69 = dma.vmem_to_hbm [thread:$0]  %s67_s21, 16, %s170_s1, [#allocation4]  }
  0x2f   :  { %128 = dma.done.wait [#allocation4], 16  }
  0x30   :  { %129 = vsyncadd [#allocation4], 4294967280 }
  0x31   :  { %73 = vsyncpa [#allocation3], 1 }
  0x32   :  { %74 = vsyncpa [#allocation4], 1 }

</bundles_post_ra>
